<compile_context>
chip_gen: v5e
topology: v5e:2x2
jax: 0.10.0
libtpu: 0.0.40
codegen_flags: <defaults>
</compile_context>

<pallas_src>
import math

import jax
import jax.numpy as jnp
from jax.experimental import pallas as pl
from jax.experimental.pallas import tpu as pltpu


_VMEM_LIMIT = 64 * 1024 * 1024  # safe on v5e/v6e (128 MiB phys) and v7x (64 MiB phys)
_ROW_TILE = 512                 # row tile for the big projection matmuls


# -----------------------------------------------------------------------------
# Kernel 1: fused embedding Linear + ReLU + layer-0 input projection
#   zx0 = relu(x @ W_in^T + b_in) @ W_ih0^T + (b_ih0 + b_hh0)
# One big MXU matmul over all T*B rows (hoisted out of the recurrence).
# -----------------------------------------------------------------------------
def _embed_project_kernel(x_ref, win_ref, bin_ref, wih_ref, b_ref, o_ref):
    emb = jnp.dot(x_ref[...], win_ref[...], preferred_element_type=jnp.float32)
    emb = jnp.maximum(emb + bin_ref[...], 0.0)
    o_ref[...] = (jnp.dot(emb, wih_ref[...], preferred_element_type=jnp.float32)
                  + b_ref[...])


def embed_project(x2d, win_t, b_in, wih_t, b):
    N, In = x2d.shape
    E = win_t.shape[1]
    G4 = wih_t.shape[1]
    tile = N if N <= _ROW_TILE else _ROW_TILE
    grid = (pl.cdiv(N, tile),)
    return pl.pallas_call(
        _embed_project_kernel,
        out_shape=jax.ShapeDtypeStruct((N, G4), jnp.float32),
        grid=grid,
        in_specs=[
            pl.BlockSpec((tile, In), lambda i: (i, 0)),
            pl.BlockSpec((In, E), lambda i: (0, 0)),
            pl.BlockSpec((1, E), lambda i: (0, 0)),
            pl.BlockSpec((E, G4), lambda i: (0, 0)),
            pl.BlockSpec((1, G4), lambda i: (0, 0)),
        ],
        out_specs=pl.BlockSpec((tile, G4), lambda i: (i, 0)),
        compiler_params=pltpu.CompilerParams(
            dimension_semantics=("parallel",),
            vmem_limit_bytes=_VMEM_LIMIT),
    )(x2d, win_t, b_in.reshape(1, E), wih_t, b.reshape(1, G4))


# -----------------------------------------------------------------------------
# Kernel 2: hoisted input projection for layers >= 1
#   zx_l = h_prev_layer @ W_ih_l^T + (b_ih_l + b_hh_l)     (one big matmul)
# -----------------------------------------------------------------------------
def _project_kernel(h_ref, wih_ref, b_ref, o_ref):
    o_ref[...] = (jnp.dot(h_ref[...], wih_ref[...], preferred_element_type=jnp.float32)
                  + b_ref[...])


def input_project(h2d, wih_t, b):
    N, H = h2d.shape
    G4 = wih_t.shape[1]
    tile = N if N <= _ROW_TILE else _ROW_TILE
    grid = (pl.cdiv(N, tile),)
    return pl.pallas_call(
        _project_kernel,
        out_shape=jax.ShapeDtypeStruct((N, G4), jnp.float32),
        grid=grid,
        in_specs=[
            pl.BlockSpec((tile, H), lambda i: (i, 0)),
            pl.BlockSpec((H, G4), lambda i: (0, 0)),
            pl.BlockSpec((1, G4), lambda i: (0, 0)),
        ],
        out_specs=pl.BlockSpec((tile, G4), lambda i: (i, 0)),
        compiler_params=pltpu.CompilerParams(
            dimension_semantics=("parallel",),
            vmem_limit_bytes=_VMEM_LIMIT),
    )(h2d, wih_t, b.reshape(1, G4))


# -----------------------------------------------------------------------------
# Kernel 3: recurrence for one LSTM layer.
# Whole zx slab [T, B, 4H] and output slab [T, B, H] are VMEM-resident for the
# entire kernel (single DMA in / single DMA out). Time loop is an in-kernel
# pl.loop (no per-step grid launch, no per-step HBM traffic). Per step:
#   z = zx[t] + h @ W_hh^T   (small MXU matmul)  ->  gates -> c, h update.
# h and c are carried in VMEM scratch.
# -----------------------------------------------------------------------------
def _lstm_recurrence_kernel(zx_ref, whh_ref, o_ref, h_scr, c_scr):
    T = zx_ref.shape[0]
    H = whh_ref.shape[0]

    h_scr[...] = jnp.zeros_like(h_scr)   # self.hidden is None -> zero init (h, c)
    c_scr[...] = jnp.zeros_like(c_scr)
    whh = whh_ref[...]                   # loop-invariant, keep in registers

    @pl.loop(0, T)
    def _(t):
        z = zx_ref[t] + jnp.dot(h_scr[...], whh,
                                preferred_element_type=jnp.float32)   # [B, 4H]
        # TODO(synk): for production sizes make H a multiple of 128 so each gate
        # slice is a whole-vreg (lane-aligned) slice instead of a 32-lane sub-slice.
        i_g = jax.nn.sigmoid(z[:, 0 * H:1 * H])
        f_g = jax.nn.sigmoid(z[:, 1 * H:2 * H])
        g_g = jnp.tanh(z[:, 2 * H:3 * H])
        o_g = jax.nn.sigmoid(z[:, 3 * H:4 * H])

        c_new = f_g * c_scr[...] + i_g * g_g
        h_new = o_g * jnp.tanh(c_new)

        c_scr[...] = c_new
        h_scr[...] = h_new
        o_ref[t] = h_new


def lstm_recurrence(zx_tm, whh_t):
    # zx_tm: [T, B, 4H] time-major; returns h sequence [T, B, H]
    # TODO(synk): for production-size T (resident slabs > ~48 MiB on v7x), chunk T
    # with a grid and carry h/c in scratch across chunks instead of one big slab.
    T, B, G4 = zx_tm.shape
    H = whh_t.shape[0]
    return pl.pallas_call(
        _lstm_recurrence_kernel,
        out_shape=jax.ShapeDtypeStruct((T, B, H), jnp.float32),
        grid=(1,),
        in_specs=[
            pl.BlockSpec((T, B, G4), lambda i: (0, 0, 0)),
            pl.BlockSpec((H, G4), lambda i: (0, 0)),
        ],
        out_specs=pl.BlockSpec((T, B, H), lambda i: (0, 0, 0)),
        scratch_shapes=[
            pltpu.VMEM((B, H), jnp.float32),   # h carry
            pltpu.VMEM((B, H), jnp.float32),   # c carry
        ],
        compiler_params=pltpu.CompilerParams(
            dimension_semantics=("arbitrary",),
            vmem_limit_bytes=_VMEM_LIMIT),
    )(zx_tm, whh_t)


# -----------------------------------------------------------------------------
# Parameter init (deterministic, mirrors init_weights() intent)
# -----------------------------------------------------------------------------
def _xavier_uniform(key, shape, gain):
    fan_out, fan_in = shape[0], shape[1]
    bound = gain * math.sqrt(6.0 / (fan_in + fan_out))
    return jax.random.uniform(key, shape, jnp.float32, -bound, bound)


def make_params(key, input_size, embedding_size, hidden_size, num_layers):
    gain_relu = math.sqrt(2.0)     # calculate_gain('relu')
    gain_sigmoid = 1.0             # calculate_gain('sigmoid')
    keys = jax.random.split(key, 2 + 2 * num_layers)

    params = {
        "w_in": _xavier_uniform(keys[0], (embedding_size, input_size), gain_relu),
        "b_in": jax.random.uniform(keys[1], (embedding_size,), jnp.float32,
                                   -1.0 / math.sqrt(input_size),
                                   1.0 / math.sqrt(input_size)),
        "layers": [],
    }
    for l in range(num_layers):
        in_dim = embedding_size if l == 0 else hidden_size
        w_ih = _xavier_uniform(keys[2 + 2 * l], (4 * hidden_size, in_dim), gain_sigmoid)
        w_hh = _xavier_uniform(keys[3 + 2 * l], (4 * hidden_size, hidden_size), gain_sigmoid)
        b_ih = jnp.full((4 * hidden_size,), 0.25, jnp.float32)   # constant(0.25)
        b_hh = jnp.full((4 * hidden_size,), 0.25, jnp.float32)
        params["layers"].append({"w_ih": w_ih, "w_hh": w_hh, "b": b_ih + b_hh})
    return params


# -----------------------------------------------------------------------------
# Full forward: glue in plain JAX, compute in Pallas kernels.
# -----------------------------------------------------------------------------
@jax.jit
def lstm_base_forward(x, w_in_t, b_in, layer_wih_t, layer_whh_t, layer_b):
    B, T, In = x.shape
    H = layer_whh_t[0].shape[0]

    # Time-major row order (row = t*B + b) so the recurrence kernel reads a
    # contiguous (B, 4H) tile per step with a free leading-dim index.
    # TODO(synk): fold this boundary transpose (and the final one) into the
    # kernels' index_maps for production sizes to save two HBM round-trips.
    x_rows = jnp.transpose(x, (1, 0, 2)).reshape(T * B, In)

    # Layer 0: fused embedding + hoisted input projection, then recurrence.
    zx = embed_project(x_rows, w_in_t, b_in, layer_wih_t[0], layer_b[0])   # [T*B, 4H]
    h_slab = lstm_recurrence(zx.reshape(T, B, 4 * H), layer_whh_t[0])      # [T, B, H]

    # Deeper layers: hoisted input projection (one big matmul) + recurrence.
    for l in range(1, len(layer_whh_t)):
        zx = input_project(h_slab.reshape(T * B, H), layer_wih_t[l], layer_b[l])
        h_slab = lstm_recurrence(zx.reshape(T, B, 4 * H), layer_whh_t[l])

    return jnp.transpose(h_slab, (1, 0, 2))   # batch-first [B, T, H]


# -----------------------------------------------------------------------------
# Pure-JAX reference for sanity check
# -----------------------------------------------------------------------------
def reference_forward(x, params, hidden_size):
    emb = jax.nn.relu(jnp.einsum("bti,ei->bte", x, params["w_in"]) + params["b_in"])
    h_seq = emb
    for layer in params["layers"]:
        B, T, _ = h_seq.shape
        h = jnp.zeros((B, hidden_size), jnp.float32)
        c = jnp.zeros((B, hidden_size), jnp.float32)
        outs = []
        for t in range(T):
            z = h_seq[:, t, :] @ layer["w_ih"].T + h @ layer["w_hh"].T + layer["b"]
            i = jax.nn.sigmoid(z[:, 0 * hidden_size:1 * hidden_size])
            f = jax.nn.sigmoid(z[:, 1 * hidden_size:2 * hidden_size])
            g = jnp.tanh(z[:, 2 * hidden_size:3 * hidden_size])
            o = jax.nn.sigmoid(z[:, 3 * hidden_size:4 * hidden_size])
            c = f * c + i * g
            h = o * jnp.tanh(c)
            outs.append(h)
        h_seq = jnp.stack(outs, axis=1)
    return h_seq


if __name__ == "__main__":
    B, T = 2, 8
    input_size, embedding_size, hidden_size, num_layers = 16, 32, 32, 2

    key = jax.random.PRNGKey(0)
    kx, kp = jax.random.split(key)
    x = jax.random.normal(kx, (B, T, input_size), jnp.float32)
    params = make_params(kp, input_size, embedding_size, hidden_size, num_layers)

    w_in_t = jnp.transpose(params["w_in"])                       # [In, E]
    layer_wih_t = tuple(jnp.transpose(l["w_ih"]) for l in params["layers"])  # [in, 4H]
    layer_whh_t = tuple(jnp.transpose(l["w_hh"]) for l in params["layers"])  # [H, 4H]
    layer_b = tuple(l["b"] for l in params["layers"])            # [4H]

    out = lstm_base_forward(x, w_in_t, params["b_in"],
                            layer_wih_t, layer_whh_t, layer_b)
    out = jax.block_until_ready(out)

    ref = reference_forward(x, params, hidden_size)
    assert out.shape == (B, T, hidden_size)
    assert jnp.allclose(out, ref, atol=1e-4, rtol=1e-4), "mismatch vs reference"

    print("KERNEL_OK")
</pallas_src>

<mosaic_0001>
module attributes {stable_mosaic.version = 11 : i64} {
  func.func @_project_kernel(%arg0: i32, %arg1: memref<16x32xf32, #tpu.memory_space<vmem>>, %arg2: memref<32x128xf32, #tpu.memory_space<vmem>>, %arg3: memref<1x128xf32, #tpu.memory_space<vmem>>, %arg4: memref<16x128xf32, #tpu.memory_space<vmem>>) attributes {dimension_semantics = [#tpu.dimension_semantics<parallel>], iteration_bounds = array<i64: 1>, scalar_prefetch = 0 : i64, scratch_operands = 0 : i64, tpu.core_type = #tpu.core_type<tc>, window_params = [{transform_indices = @transform_0, window_bounds = array<i64: 16, 32>}, {pipeline_mode = #tpu.pipeline_mode<synchronous>, transform_indices = @transform_1, window_bounds = array<i64: 32, 128>}, {pipeline_mode = #tpu.pipeline_mode<synchronous>, transform_indices = @transform_2, window_bounds = array<i64: 1, 128>}, {transform_indices = @transform_3, window_bounds = array<i64: 16, 128>}]} {
    %c0 = arith.constant 0 : index
    %c0_0 = arith.constant 0 : index
    %0 = vector.load %arg1[%c0, %c0_0] : memref<16x32xf32, #tpu.memory_space<vmem>>, vector<16x32xf32>
    %c0_1 = arith.constant 0 : index
    %c0_2 = arith.constant 0 : index
    %1 = vector.load %arg2[%c0_1, %c0_2] : memref<32x128xf32, #tpu.memory_space<vmem>>, vector<32x128xf32>
    %cst = arith.constant dense<0.000000e+00> : vector<16x128xf32>
    %2 = tpu.matmul %0, %1, %cst {dimension_numbers = #tpu.dot_dimension_numbers<[1], [0], [0], [1], [0, 0, 1, 1], [], []>} : vector<16x32xf32>, vector<32x128xf32>, vector<16x128xf32> -> vector<16x128xf32>
    %c0_3 = arith.constant 0 : index
    %c0_4 = arith.constant 0 : index
    %3 = vector.load %arg3[%c0_3, %c0_4] : memref<1x128xf32, #tpu.memory_space<vmem>>, vector<1x128xf32>
    %4 = vector.broadcast %3 : vector<1x128xf32> to vector<16x128xf32>
    %5 = arith.addf %2, %4 : vector<16x128xf32>
    %c0_5 = arith.constant 0 : index
    %c0_6 = arith.constant 0 : index
    %6 = vector.load %arg4[%c0_5, %c0_6] : memref<16x128xf32, #tpu.memory_space<vmem>>, vector<16x128xf32>
    tpu.vector_store %arg4[%c0_5, %c0_6], %5 {strides = array<i32>} : memref<16x128xf32, #tpu.memory_space<vmem>>, vector<16x128xf32>,
    return
  }
  func.func @transform_0(%arg0: i32) -> (i32, i32) {
    %c0_i32 = arith.constant 0 : i32
    %c0_i32_0 = arith.constant 0 : i32
    return %arg0, %c0_i32 : i32, i32
  }
  func.func @transform_1(%arg0: i32) -> (i32, i32) {
    %c0_i32 = arith.constant 0 : i32
    %c0_i32_0 = arith.constant 0 : i32
    %c0_i32_1 = arith.constant 0 : i32
    return %c0_i32, %c0_i32_0 : i32, i32
  }
  func.func @transform_2(%arg0: i32) -> (i32, i32) {
    %c0_i32 = arith.constant 0 : i32
    %c0_i32_0 = arith.constant 0 : i32
    %c0_i32_1 = arith.constant 0 : i32
    return %c0_i32, %c0_i32_0 : i32, i32
  }
  func.func @transform_3(%arg0: i32) -> (i32, i32) {
    %c0_i32 = arith.constant 0 : i32
    %c0_i32_0 = arith.constant 0 : i32
    return %arg0, %c0_i32 : i32, i32
  }
}

module attributes {stable_mosaic.version = 11 : i64} {
  func.func @_embed_project_kernel(%arg0: i32, %arg1: memref<16x16xf32, #tpu.memory_space<vmem>>, %arg2: memref<16x32xf32, #tpu.memory_space<vmem>>, %arg3: memref<1x32xf32, #tpu.memory_space<vmem>>, %arg4: memref<32x128xf32, #tpu.memory_space<vmem>>, %arg5: memref<1x128xf32, #tpu.memory_space<vmem>>, %arg6: memref<16x128xf32, #tpu.memory_space<vmem>>) attributes {dimension_semantics = [#tpu.dimension_semantics<parallel>], iteration_bounds = array<i64: 1>, scalar_prefetch = 0 : i64, scratch_operands = 0 : i64, tpu.core_type = #tpu.core_type<tc>, window_params = [{transform_indices = @transform_0, window_bounds = array<i64: 16, 16>}, {pipeline_mode = #tpu.pipeline_mode<synchronous>, transform_indices = @transform_1, window_bounds = array<i64: 16, 32>}, {pipeline_mode = #tpu.pipeline_mode<synchronous>, transform_indices = @transform_2, window_bounds = array<i64: 1, 32>}, {pipeline_mode = #tpu.pipeline_mode<synchronous>, transform_indices = @transform_3, window_bounds = array<i64: 32, 128>}, {pipeline_mode = #tpu.pipeline_mode<synchronous>, transform_indices = @transform_4, window_bounds = array<i64: 1, 128>}, {transform_indices = @transform_5, window_bounds = array<i64: 16, 128>}]} {
    %c0 = arith.constant 0 : index
    %c0_0 = arith.constant 0 : index
    %0 = vector.load %arg1[%c0, %c0_0] : memref<16x16xf32, #tpu.memory_space<vmem>>, vector<16x16xf32>
    %c0_1 = arith.constant 0 : index
    %c0_2 = arith.constant 0 : index
    %1 = vector.load %arg2[%c0_1, %c0_2] : memref<16x32xf32, #tpu.memory_space<vmem>>, vector<16x32xf32>
    %cst = arith.constant dense<0.000000e+00> : vector<16x32xf32>
    %2 = tpu.matmul %0, %1, %cst {dimension_numbers = #tpu.dot_dimension_numbers<[1], [0], [0], [1], [0, 0, 1, 1], [], []>} : vector<16x16xf32>, vector<16x32xf32>, vector<16x32xf32> -> vector<16x32xf32>
    %c0_3 = arith.constant 0 : index
    %c0_4 = arith.constant 0 : index
    %3 = vector.load %arg3[%c0_3, %c0_4] : memref<1x32xf32, #tpu.memory_space<vmem>>, vector<1x32xf32>
    %4 = vector.broadcast %3 : vector<1x32xf32> to vector<16x32xf32>
    %5 = arith.addf %2, %4 : vector<16x32xf32>
    %cst_5 = arith.constant 0.000000e+00 : f32
    %6 = vector.broadcast %cst_5 : f32 to vector<16x32xf32>
    %7 = arith.maximumf %5, %6 : vector<16x32xf32>
    %c0_6 = arith.constant 0 : index
    %c0_7 = arith.constant 0 : index
    %8 = vector.load %arg4[%c0_6, %c0_7] : memref<32x128xf32, #tpu.memory_space<vmem>>, vector<32x128xf32>
    %cst_8 = arith.constant dense<0.000000e+00> : vector<16x128xf32>
    %9 = tpu.matmul %7, %8, %cst_8 {dimension_numbers = #tpu.dot_dimension_numbers<[1], [0], [0], [1], [0, 0, 1, 1], [], []>} : vector<16x32xf32>, vector<32x128xf32>, vector<16x128xf32> -> vector<16x128xf32>
    %c0_9 = arith.constant 0 : index
    %c0_10 = arith.constant 0 : index
    %10 = vector.load %arg5[%c0_9, %c0_10] : memref<1x128xf32, #tpu.memory_space<vmem>>, vector<1x128xf32>
    %11 = vector.broadcast %10 : vector<1x128xf32> to vector<16x128xf32>
    %12 = arith.addf %9, %11 : vector<16x128xf32>
    %c0_11 = arith.constant 0 : index
    %c0_12 = arith.constant 0 : index
    %13 = vector.load %arg6[%c0_11, %c0_12] : memref<16x128xf32, #tpu.memory_space<vmem>>, vector<16x128xf32>
    tpu.vector_store %arg6[%c0_11, %c0_12], %12 {strides = array<i32>} : memref<16x128xf32, #tpu.memory_space<vmem>>, vector<16x128xf32>,
    return
  }
  func.func @transform_0(%arg0: i32) -> (i32, i32) {
    %c0_i32 = arith.constant 0 : i32
    %c0_i32_0 = arith.constant 0 : i32
    return %arg0, %c0_i32 : i32, i32
  }
  func.func @transform_1(%arg0: i32) -> (i32, i32) {
    %c0_i32 = arith.constant 0 : i32
    %c0_i32_0 = arith.constant 0 : i32
    %c0_i32_1 = arith.constant 0 : i32
    return %c0_i32, %c0_i32_0 : i32, i32
  }
  func.func @transform_2(%arg0: i32) -> (i32, i32) {
    %c0_i32 = arith.constant 0 : i32
    %c0_i32_0 = arith.constant 0 : i32
    %c0_i32_1 = arith.constant 0 : i32
    return %c0_i32, %c0_i32_0 : i32, i32
  }
  func.func @transform_3(%arg0: i32) -> (i32, i32) {
    %c0_i32 = arith.constant 0 : i32
    %c0_i32_0 = arith.constant 0 : i32
    %c0_i32_1 = arith.constant 0 : i32
    return %c0_i32, %c0_i32_0 : i32, i32
  }
  func.func @transform_4(%arg0: i32) -> (i32, i32) {
    %c0_i32 = arith.constant 0 : i32
    %c0_i32_0 = arith.constant 0 : i32
    %c0_i32_1 = arith.constant 0 : i32
    return %c0_i32, %c0_i32_0 : i32, i32
  }
  func.func @transform_5(%arg0: i32) -> (i32, i32) {
    %c0_i32 = arith.constant 0 : i32
    %c0_i32_0 = arith.constant 0 : i32
    return %arg0, %c0_i32 : i32, i32
  }
}

module attributes {stable_mosaic.version = 11 : i64} {
  func.func @_lstm_recurrence_kernel(%arg0: i32, %arg1: memref<8x2x128xf32, #tpu.memory_space<vmem>>, %arg2: memref<32x128xf32, #tpu.memory_space<vmem>>, %arg3: memref<8x2x32xf32, #tpu.memory_space<vmem>>, %arg4: memref<2x32xf32, #tpu.memory_space<vmem>>, %arg5: memref<2x32xf32, #tpu.memory_space<vmem>>) attributes {dimension_semantics = [#tpu.dimension_semantics<arbitrary>], iteration_bounds = array<i64: 1>, scalar_prefetch = 0 : i64, scratch_operands = 2 : i64, tpu.core_type = #tpu.core_type<tc>, window_params = [{pipeline_mode = #tpu.pipeline_mode<synchronous>, transform_indices = @transform_0, window_bounds = array<i64: 8, 2, 128>}, {pipeline_mode = #tpu.pipeline_mode<synchronous>, transform_indices = @transform_1, window_bounds = array<i64: 32, 128>}, {pipeline_mode = #tpu.pipeline_mode<synchronous>, transform_indices = @transform_2, window_bounds = array<i64: 8, 2, 32>}]} {
    %cst = arith.constant 0.000000e+00 : f32
    %0 = vector.broadcast %cst : f32 to vector<2x32xf32>
    %c0 = arith.constant 0 : index
    %c0_0 = arith.constant 0 : index
    %1 = vector.load %arg4[%c0, %c0_0] : memref<2x32xf32, #tpu.memory_space<vmem>>, vector<2x32xf32>
    tpu.vector_store %arg4[%c0, %c0_0], %0 {strides = array<i32>} : memref<2x32xf32, #tpu.memory_space<vmem>>, vector<2x32xf32>,
    %cst_1 = arith.constant 0.000000e+00 : f32
    %2 = vector.broadcast %cst_1 : f32 to vector<2x32xf32>
    %c0_2 = arith.constant 0 : index
    %c0_3 = arith.constant 0 : index
    %3 = vector.load %arg5[%c0_2, %c0_3] : memref<2x32xf32, #tpu.memory_space<vmem>>, vector<2x32xf32>
    tpu.vector_store %arg5[%c0_2, %c0_3], %2 {strides = array<i32>} : memref<2x32xf32, #tpu.memory_space<vmem>>, vector<2x32xf32>,
    %c0_4 = arith.constant 0 : index
    %c0_5 = arith.constant 0 : index
    %4 = vector.load %arg2[%c0_4, %c0_5] : memref<32x128xf32, #tpu.memory_space<vmem>>, vector<32x128xf32>
    %c0_i32 = arith.constant 0 : i32
    %c8_i32 = arith.constant 8 : i32
    %5 = arith.addi %c0_i32, %c8_i32 : i32
    %c1_i32 = arith.constant 1 : i32
    scf.for %arg6 = %c0_i32 to %5 step %c1_i32  : i32 {
      %c1_i32_7 = arith.constant 1 : i32
      %6 = arith.muli %arg6, %c1_i32_7 : i32
      %c0_i32_8 = arith.constant 0 : i32
      %7 = arith.addi %c0_i32_8, %6 : i32
      %8 = arith.index_cast %7 : i32 to index
      %c0_9 = arith.constant 0 : index
      %c0_10 = arith.constant 0 : index
      %9 = vector.load %arg1[%8, %c0_9, %c0_10] : memref<8x2x128xf32, #tpu.memory_space<vmem>>, vector<1x2x128xf32>
      %10 = vector.shape_cast %9 : vector<1x2x128xf32> to vector<2x128xf32>
      %c0_11 = arith.constant 0 : index
      %c0_12 = arith.constant 0 : index
      %11 = vector.load %arg4[%c0_11, %c0_12] : memref<2x32xf32, #tpu.memory_space<vmem>>, vector<2x32xf32>
      %cst_13 = arith.constant dense<0.000000e+00> : vector<2x128xf32>
      %12 = tpu.matmul %11, %4, %cst_13 {dimension_numbers = #tpu.dot_dimension_numbers<[1], [0], [0], [1], [0, 0, 1, 1], [], []>} : vector<2x32xf32>, vector<32x128xf32>, vector<2x128xf32> -> vector<2x128xf32>
      %13 = arith.addf %10, %12 : vector<2x128xf32>
      %14 = vector.extract_strided_slice %13 {offsets = [0, 0], sizes = [2, 32], strides = [1, 1]} : vector<2x128xf32> to vector<2x32xf32>
      %15 = arith.negf %14 : vector<2x32xf32>
      %16 = math.exp %15 : vector<2x32xf32>
      %cst_14 = arith.constant 1.000000e+00 : f32
      %17 = vector.broadcast %cst_14 : f32 to vector<2x32xf32>
      %18 = arith.addf %17, %16 : vector<2x32xf32>
      %19 = arith.divf %17, %18 : vector<2x32xf32>
      %20 = vector.extract_strided_slice %13 {offsets = [0, 32], sizes = [2, 32], strides = [1, 1]} : vector<2x128xf32> to vector<2x32xf32>
      %21 = arith.negf %20 : vector<2x32xf32>
      %22 = math.exp %21 : vector<2x32xf32>
      %cst_15 = arith.constant 1.000000e+00 : f32
      %23 = vector.broadcast %cst_15 : f32 to vector<2x32xf32>
      %24 = arith.addf %23, %22 : vector<2x32xf32>
      %25 = arith.divf %23, %24 : vector<2x32xf32>
      %26 = vector.extract_strided_slice %13 {offsets = [0, 64], sizes = [2, 32], strides = [1, 1]} : vector<2x128xf32> to vector<2x32xf32>
      %27 = math.tanh %26 : vector<2x32xf32>
      %28 = vector.extract_strided_slice %13 {offsets = [0, 96], sizes = [2, 32], strides = [1, 1]} : vector<2x128xf32> to vector<2x32xf32>
      %29 = arith.negf %28 : vector<2x32xf32>
      %30 = math.exp %29 : vector<2x32xf32>
      %cst_16 = arith.constant 1.000000e+00 : f32
      %31 = vector.broadcast %cst_16 : f32 to vector<2x32xf32>
      %32 = arith.addf %31, %30 : vector<2x32xf32>
      %33 = arith.divf %31, %32 : vector<2x32xf32>
      %c0_17 = arith.constant 0 : index
      %c0_18 = arith.constant 0 : index
      %34 = vector.load %arg5[%c0_17, %c0_18] : memref<2x32xf32, #tpu.memory_space<vmem>>, vector<2x32xf32>
      %35 = arith.mulf %25, %34 : vector<2x32xf32>
      %36 = arith.mulf %19, %27 : vector<2x32xf32>
      %37 = arith.addf %35, %36 : vector<2x32xf32>
      %38 = math.tanh %37 : vector<2x32xf32>
      %39 = arith.mulf %33, %38 : vector<2x32xf32>
      %c0_19 = arith.constant 0 : index
      %c0_20 = arith.constant 0 : index
      %40 = vector.load %arg5[%c0_19, %c0_20] : memref<2x32xf32, #tpu.memory_space<vmem>>, vector<2x32xf32>
      tpu.vector_store %arg5[%c0_19, %c0_20], %37 {strides = array<i32>} : memref<2x32xf32, #tpu.memory_space<vmem>>, vector<2x32xf32>,
      %c0_21 = arith.constant 0 : index
      %c0_22 = arith.constant 0 : index
      %41 = vector.load %arg4[%c0_21, %c0_22] : memref<2x32xf32, #tpu.memory_space<vmem>>, vector<2x32xf32>
      tpu.vector_store %arg4[%c0_21, %c0_22], %39 {strides = array<i32>} : memref<2x32xf32, #tpu.memory_space<vmem>>, vector<2x32xf32>,
      %42 = arith.index_cast %7 : i32 to index
      %c0_23 = arith.constant 0 : index
      %c0_24 = arith.constant 0 : index
      %43 = vector.load %arg3[%42, %c0_23, %c0_24] : memref<8x2x32xf32, #tpu.memory_space<vmem>>, vector<1x2x32xf32>
      %44 = vector.shape_cast %43 : vector<1x2x32xf32> to vector<2x32xf32>
      %45 = vector.shape_cast %39 : vector<2x32xf32> to vector<1x2x32xf32>
      tpu.vector_store %arg3[%42, %c0_23, %c0_24], %45 {strides = array<i32>} : memref<8x2x32xf32, #tpu.memory_space<vmem>>, vector<1x2x32xf32>,
    }
    %c8_i32_6 = arith.constant 8 : i32
    return
  }
  func.func @transform_0(%arg0: i32) -> (i32, i32, i32) {
    %c0_i32 = arith.constant 0 : i32
    %c0_i32_0 = arith.constant 0 : i32
    %c0_i32_1 = arith.constant 0 : i32
    %c0_i32_2 = arith.constant 0 : i32
    return %c0_i32, %c0_i32_0, %c0_i32_1 : i32, i32, i32
  }
  func.func @transform_1(%arg0: i32) -> (i32, i32) {
    %c0_i32 = arith.constant 0 : i32
    %c0_i32_0 = arith.constant 0 : i32
    %c0_i32_1 = arith.constant 0 : i32
    return %c0_i32, %c0_i32_0 : i32, i32
  }
  func.func @transform_2(%arg0: i32) -> (i32, i32, i32) {
    %c0_i32 = arith.constant 0 : i32
    %c0_i32_0 = arith.constant 0 : i32
    %c0_i32_1 = arith.constant 0 : i32
    %c0_i32_2 = arith.constant 0 : i32
    return %c0_i32, %c0_i32_0, %c0_i32_1 : i32, i32, i32
  }
}

</mosaic_0001>

<bundles_post_ra>
// kernel: lstm_base_forward.6
= control target key start
LH: loop header
LB: loop body
LE: loop exit
PB: predicated region body
PF: predicated region fallthrough
CT: control target
= control target key end

     0   :  { %8 = vsyncpa [#allocation3], 0  ;;  %s113_s15 = smov [#allocation2]   ;;  %s114_s17 = smov 128   ;;  %s154_s0 = inlined_call_operand.vmem [shape: f32[16,32], index: 0, kind: input, shape index: {}]   ;;  %s155_s1 = inlined_call_operand.hbm [shape: f32[32,128], index: 1, kind: input, shape index: {}]   ;;  %s156_s2 = inlined_call_operand.vmem [shape: f32[1,128], index: 2, kind: input, shape index: {}]   ;;  %s157_s3 = inlined_call_operand.vmem [shape: f32[16,128], index: 3, kind: output, shape index: {}]  }
   0x1   :  { %s15_s14 = sshll.u32 %s155_s1, 4  ;;  %s17_s16 = sshll.u32 %s113_s15, 4  ;;  %s16_s14 = int_to_ptr.hbm [resolvable:$true] %s15_s14  ;;  %s18_s16 = int_to_ptr.vmem [resolvable:$true] %s17_s16 }
   0x2   :  { %s115_s18 = smov 8  }
   0x3   :  { %23 = dma.hbm_to_vmem [thread:$0]  %s16_s14, 512, %s18_s16, [#allocation3], %s114_s17, %s114_s17, %s115_s18  }
   0x4   :  { %111 = dma.done.wait [#allocation3], 512  }
   0x5   :  { %112 = vsyncadd [#allocation3], 4294966784  ;;  %v35_v0 = vld [vmem:[#allocation2 + $0x18] sm:$0xff]  ;;  %v34_v1 = vld [vmem:[#allocation2 + $0x10] sm:$0xff]  ;;  %vm40_vm0 = vcmask 261120  }
   0x6   :  { %59 = vmatpush.msra.mxu0 %v35_v0  ;;  %79 = vmatpush.msra.mxu1 %v35_v0  ;;  %v33_v2 = vld [vmem:[#allocation2 + $0x8] sm:$0xff]  ;;  %v32_v3 = vld [vmem:[#allocation2] sm:$0xff] }
   0x7   :  { %v30_v4 = vld [vmem:[%s154_s0] sm:$0xff]  ;;  %v31_v5 = vld [vmem:[%s154_s0 + $0x8] sm:$0xff] }
   0x8   :  { %60 = vmatpush.msra.mxu0 %v34_v1  ;;  %80 = vmatpush.msra.mxu1 %v34_v1  ;;  %v86_v6 = vld [vmem:[%s156_s2] ss:$0 sm:$0xff] }
   0xa   :  { %61 = vmatpush.msra.mxu0 %v33_v2  ;;  %81 = vmatpush.msra.mxu1 %v33_v2 }
   0xc   :  { %62 = vmatpush.msra.mxu0 %v32_v3  ;;  %82 = vmatpush.msra.mxu1 %v32_v3 }
   0xd   :  { %77 = vmatmul.msk.f32.vlgmr.msra.gmra.mxu0 %vm40_vm0, %v30_v4  ;;  %78 = vmatmul.msk.f32.vlgmr.msra.gmra.mxu1 %vm40_vm0, %v31_v5 }
  0x8a   :  { %v64_v7 = vpop.f32.mrf.mxu0  ;;  %v67_v8 = vpop.f32.mrf.mxu1 }
  0x8b   :  { %v65_v9 = vadd.f32 %v86_v6, %v64_v7  ;;  %v68_v10 = vadd.f32 %v86_v6, %v67_v8 }
  0x8d   :  { %70 = vst [vmem:[%s157_s3] sm:$0xff] %v65_v9 }
  0x8e   :  { %71 = vst [vmem:[%s157_s3 + $0x8] sm:$0xff] %v68_v10 }
  0x8f   :  { %76 = vsyncpa [#allocation3], 1 }

// kernel: lstm_base_forward.4
= control target key start
LH: loop header
LB: loop body
LE: loop exit
PB: predicated region body
PF: predicated region fallthrough
CT: control target
= control target key end

     0   :  { %10 = vsyncpa [#allocation3], 0  ;;  %s162_s21 = smov [#allocation2]   ;;  %s163_s23 = smov 128   ;;  %s228_s0 = inlined_call_operand.vmem [shape: f32[16,16], index: 0, kind: input, shape index: {}]   ;;  %s229_s1 = inlined_call_operand.hbm [shape: f32[16,32], index: 1, kind: input, shape index: {}]   ;;  %s230_s2 = inlined_call_operand.vmem [shape: f32[1,32], index: 2, kind: input, shape index: {}]   ;;  %s231_s3 = inlined_call_operand.vmem [shape: f32[32,128], index: 3, kind: input, shape index: {}]   ;;  %s232_s4 = inlined_call_operand.vmem [shape: f32[1,128], index: 4, kind: input, shape index: {}]   ;;  %s233_s5 = inlined_call_operand.vmem [shape: f32[16,128], index: 5, kind: output, shape index: {}]  }
   0x1   :  { %s17_s20 = sshll.u32 %s229_s1, 4  ;;  %s19_s22 = sshll.u32 %s162_s21, 4  ;;  %s18_s20 = int_to_ptr.hbm [resolvable:$true] %s17_s20  ;;  %s20_s22 = int_to_ptr.vmem [resolvable:$true] %s19_s22 }
   0x2   :  { %s164_s24 = smov 8  }
   0x3   :  { %25 = dma.hbm_to_vmem [thread:$0]  %s18_s20, 256, %s20_s22, [#allocation3], %s163_s23, %s163_s23, %s164_s24  }
   0x4   :  { %160 = dma.done.wait [#allocation3], 256  }
   0x5   :  { %161 = vsyncadd [#allocation3], 4294967040  ;;  %v39_v0 = vld [vmem:[#allocation2 + $0x8] sm:$0xff]  ;;  %v38_v1 = vld [vmem:[#allocation2] sm:$0xff]  ;;  %vm44_vm0 = vcmask 130048   ;;  %vm84_vm1 = vcmask 261120  }
   0x6   :  { %v37_v2 = vld [vmem:[%s228_s0 + $0x8] sm:$0xff]  ;;  %125 = vmatpush.msra.mxu3 %v39_v0  ;;  %65 = vmatpush.msra.mxu0 %v39_v0  ;;  %v36_v3 = vld [vmem:[%s228_s0] sm:$0xff]  ;;  %v79_v4 = vld [vmem:[%s231_s3 + $0x18] sm:$0xff] }
   0x7   :  { %127 = vmatpush.msra.mxu2 %v79_v4  ;;  %103 = vmatpush.msra.mxu1 %v79_v4  ;;  %v78_v5 = vld [vmem:[%s231_s3 + $0x10] sm:$0xff]  ;;  %v77_v6 = vld [vmem:[%s231_s3 + $0x8] sm:$0xff]  ;;  %v76_v7 = vld [vmem:[%s231_s3] sm:$0xff] }
   0x8   :  { %126 = vmatpush.msra.mxu3 %v38_v1  ;;  %66 = vmatpush.msra.mxu0 %v38_v1  ;;  %v134_v8 = vld [vmem:[%s230_s2] ss:$0 sm:$0xff] }
   0x9   :  { %122 = vmatmul.msk.f32.vlgmr.msra.gmra.mxu3 %vm44_vm0, %v37_v2  ;;  %121 = vmatmul.msk.f32.vlgmr.msra.gmra.mxu0 %vm44_vm0, %v36_v3  ;;  %v135_v15 = vld [vmem:[%s232_s4] ss:$0 sm:$0xff] }
   0xa   :  { %128 = vmatpush.msra.mxu2 %v78_v5  ;;  %104 = vmatpush.msra.mxu1 %v78_v5 }
   0xc   :  { %129 = vmatpush.msra.mxu2 %v77_v6  ;;  %105 = vmatpush.msra.mxu1 %v77_v6 }
   0xe   :  { %130 = vmatpush.msra.mxu2 %v76_v7  ;;  %106 = vmatpush.msra.mxu1 %v76_v7 }
  0x86   :  { %v68_v9 = vpop.f32.mrf.mxu0 }
  0x87   :  { %v69_v10 = vadd.f32 %v134_v8, %v68_v9 }
  0x89   :  { %v74_v11 = vmax.f32 %v69_v10, 0.0 }
  0x8b   :  { %123 = vmatmul.msk.f32.vlgmr.msra.gmra.mxu1 %vm84_vm1, %v74_v11 }
  0x8c   :  { %v71_v12 = vpop.f32.mrf.mxu3 }
  0x8d   :  { %v72_v13 = vadd.f32 %v134_v8, %v71_v12 }
  0x8f   :  { %v75_v14 = vmax.f32 %v72_v13, 0.0 }
  0x91   :  { %124 = vmatmul.msk.f32.vlgmr.msra.gmra.mxu2 %vm84_vm1, %v75_v14 }
 0x108   :  { %v108_v16 = vpop.f32.mrf.mxu1 }
 0x109   :  { %v109_v17 = vadd.f32 %v135_v15, %v108_v16 }
 0x10b   :  { %114 = vst [vmem:[%s233_s5] sm:$0xff] %v109_v17 }
 0x114   :  { %v111_v18 = vpop.f32.mrf.mxu2 }
 0x115   :  { %v112_v19 = vadd.f32 %v135_v15, %v111_v18 }
 0x117   :  { %115 = vst [vmem:[%s233_s5 + $0x8] sm:$0xff] %v112_v19 }
 0x118   :  { %120 = vsyncpa [#allocation3], 1 }

// kernel: lstm_base_forward.5
= control target key start
LH: loop header
LB: loop body
LE: loop exit
PB: predicated region body
PF: predicated region fallthrough
CT: control target
= control target key end

     0   :  { %7 = vsyncpa [#allocation5], 0  ;;  %s197_s12 = smov [#allocation4]   ;;  %s198_s14 = smov 128   ;;  %s263_s0 = inlined_call_operand.vmem [shape: f32[8,2,128], index: 0, kind: input, shape index: {}]   ;;  %s264_s1 = inlined_call_operand.hbm [shape: f32[32,128], index: 1, kind: input, shape index: {}]   ;;  %s265_s2 = inlined_call_operand.vmem [shape: f32[8,2,32], index: 2, kind: output, shape index: {}]  }
   0x1   :  { %s14_s11 = sshll.u32 %s264_s1, 4  ;;  %s16_s13 = sshll.u32 %s197_s12, 4  ;;  %s15_s11 = int_to_ptr.hbm [resolvable:$true] %s14_s11  ;;  %s17_s13 = int_to_ptr.vmem [resolvable:$true] %s16_s13 }
   0x2   :  { %s199_s15 = smov 8  }
   0x3   :  { %22 = dma.hbm_to_vmem [thread:$0]  %s15_s11, 512, %s17_s13, [#allocation5], %s198_s14, %s198_s14, %s199_s15  }
   0x4   :  { %191 = dma.done.wait [#allocation5], 512  }
   0x5   :  { %192 = vsyncadd [#allocation5], 4294966784  ;;  %vm27_vm0 = vcmask 254976   ;;  %v200_v0 = vmov 0.0   ;;  %v224_v1 = vld [vmem:[#allocation4] sm:$0xff]  ;;  %v226_v2 = vld [vmem:[#allocation4 + $0x8] sm:$0xff] }
   0x6   :  { %28 = vst.msk [vmem:[#allocation2] sm:$0x3] %vm27_vm0, %v200_v0  ;;  %v228_v3 = vld [vmem:[#allocation4 + $0x10] sm:$0xff]  ;;  %v230_v4 = vld [vmem:[#allocation4 + $0x18] sm:$0xff]  ;;  %s232_s1 = smov 0  }
   0x7   :  { %29 = vst.msk [vmem:[#allocation3] sm:$0x3] %vm27_vm0, %v200_v0 }
   0x8 LB: > { %60 = vmatpush.msra.mxu0 %v230_v4  ;;  %vm44_vm1 = vcmask 261120   ;;  %s137_s16 = sshll.u32 %s195_s1, 1  ;;  %s201_s20 = smov 64   ;;  %s195_s1 = sphi %s232_s1, %s39_s1  }
   0x9   : > { %s41_s19 = scalar_lea.vmem %s263_s0, %s137_s16  ;;  %s202_s21 = smov 32  }
   0xa   : > { %61 = vmatpush.msra.mxu0 %v228_v3  ;;  %v42_v6 = vld [vmem:[%s41_s19] sm:$0x3]  ;;  %s203_s22 = smov 96   ;;  %s121_s25 = scalar_lea.vmem %s265_s2, %s137_s16 }
   0xb   : > { %s39_s1 = sadd.s32 1, %s195_s1  }
   0xc   : > { %62 = vmatpush.msra.mxu0 %v226_v2  ;;  %p36_p0 = scmp.ge.s32.totalorder %s39_s1, 8  }
   0xd   : > { %v43_v5 = vld [vmem:[#allocation2] sm:$0x3] }
   0xe   : > { %63 = vmatpush.msra.mxu0 %v224_v1  ;;  %v89_v10 = vld [vmem:[#allocation3] sm:$0x3] }
   0xf   : > { %138 = vmatmul.msk.f32.vlgmr.msra.gmra.mxu0 %vm44_vm1, %v43_v5 }
  0x8c   : > { %v65_v7 = vpop.f32.mrf.mxu0 }
  0x8d   : > { %v68_v8 = vadd.f32 %v65_v7, %v42_v6 }
  0x8f   : > { %155 = vtanh.f32 %v68_v8  ;;  %v139_v11 = vmul.f32 -1.442695, %v68_v8 }
  0x91   : > { %157 = vpow2.f32 %v139_v11 }
  0x95   : > { %v156_v9 = vpop.eup %155 }
  0x96   : > { %96 = vrot.lane.b32.xlu0 %v156_v9, %s201_s20 }
  0x97   : > { %v158_v12 = vpop.eup %157 }
  0x98   : > { %v72_v13 = vadd.f32 1.0, %v158_v12 }
  0x9a   : > { %159 = vrcp.f32 %v72_v13  ;;  %v84_v19 = vand.u32 2147483648, %v72_v13  ;;  %vm78_vm3 = vweird.f32 %v72_v13  ;;  %v82_v20 = vand.u32 2147483647, %v72_v13 }
  0x9c   : > { %v85_v22 = vor.u32 1.1754944e-38, %v84_v19  ;;  %vm83_vm5 = vcmp.eq.f32.partialorder %v82_v20, 8.507059e+37 }
  0x9e   : > { %91 = vrot.lane.b32.xlu0 %v89_v10, %s202_s21 }
  0xa0   : > { %v160_v14 = vpop.eup %159 }
  0xa1   : > { %v74_v15 = vmul.f32 %v160_v14, %v72_v13  ;;  %vm79_vm2 = vweird.f32 %v160_v14 }
  0xa2   : > { %vm80_vm4 = vmor %vm78_vm3, %vm79_vm2 }
  0xa3   : > { %v75_v16 = vsub.f32 1.0, %v74_v15 }
  0xa5   : > { %v76_v17 = vmul.f32 %v160_v14, %v75_v16 }
  0xa7   : > { %v77_v18 = vadd.f32 %v160_v14, %v76_v17 }
  0xa9   : > { %v81_v21 = vsel %vm80_vm4, %v160_v14, %v77_v18 }
  0xaa   : > { %v86_v24 = vsel %vm83_vm5, %v85_v22, %v81_v21 }
 0x108   : > { %v97_v23 = vpop.permute.xlu0 %96 }
 0x109   : > { %v99_v25 = vmul.f32 %v97_v23, %v86_v24 }
 0x10b   : > { %101 = vrot.lane.b32.xlu1 %v99_v25, %s202_s21 }
 0x110   : > { %v92_v26 = vpop.permute.xlu0 %91 }
 0x111   : > { %v94_v27 = vmul.f32 %v92_v26, %v86_v24 }
 0x17d   : > { %v102_v28 = vpop.permute.xlu1 %101 }
 0x17e   : > { %v104_v29 = vadd.f32 %v102_v28, %v94_v27 }
 0x180   : > { %161 = vtanh.f32 %v104_v29  ;;  %112 = vrot.lane.b32.xlu2 %v104_v29, %s203_s22 }
 0x186   : > { %v162_v30 = vpop.eup %161 }
 0x187   : > { %107 = vrot.lane.b32.xlu1 %v162_v30, %s201_s20 }
 0x1da   : > { %v113_v31 = vpop.permute.xlu2 %112 }
 0x1db   : > { %115 = vst.msk [vmem:[#allocation3] sm:$0x3] %vm27_vm0, %v113_v31 }
 0x1f9   : > { %v108_v32 = vpop.permute.xlu1 %107 }
 0x1fa   : > { %v110_v33 = vmul.f32 %v108_v32, %v86_v24 }
 0x1fc   : > { %117 = vrot.lane.b32.xlu2 %v110_v33, %s202_s21 }
 0x254   :  { %38 = sbr.rel (!%p36_p0) target bundleno = 8 (0x8), region = 41 }
 0x256   : > { %v118_v34 = vpop.permute.xlu2 %117 }
 0x257   : > { %120 = vst.msk [vmem:[#allocation2] sm:$0x3] %vm27_vm0, %v118_v34 }
 0x258   : > { %122 = vst.msk [vmem:[%s121_s25] sm:$0x3] %vm27_vm0, %v118_v34 }
 0x259   :  { %127 = vsyncpa [#allocation5], 1 }

</bundles_post_ra>
